<compile_context>
chip_gen: v7x
topology: tpu7x:2x2x1
jax: 0.10.0
libtpu: 0.0.40
codegen_flags: <defaults>
</compile_context>

<pallas_src>
import jax
import jax.numpy as jnp
from jax.experimental import pallas as pl
from jax.experimental.pallas import tpu as pltpu


def mlp_kernel(x_ref, w1_ref, b1_ref, w2_ref, b2_ref, w3_ref, b3_ref,
               w4_ref, b4_ref, o_ref):
    # Per-tile f32 -> bf16 cast (VPU), then bf16 x bf16 -> f32 accumulation on the MXU.
    x_bf = x_ref[...].astype(jnp.bfloat16)
    h = jnp.dot(x_bf, w1_ref[...], preferred_element_type=jnp.float32)
    h = jnp.maximum(h + b1_ref[...], 0.0)

    # Layers 2-3: cast activations back to bf16 for MXU-native inputs.
    h = jnp.dot(h.astype(jnp.bfloat16), w2_ref[...],
                preferred_element_type=jnp.float32)
    h = jnp.maximum(h + b2_ref[...], 0.0)

    h = jnp.dot(h.astype(jnp.bfloat16), w3_ref[...],
                preferred_element_type=jnp.float32)
    h = jnp.maximum(h + b3_ref[...], 0.0)

    # Layer 4 (no ReLU).
    h = jnp.dot(h.astype(jnp.bfloat16), w4_ref[...],
                preferred_element_type=jnp.float32)
    o_ref[...] = (h + b4_ref[...]).astype(o_ref.dtype)


def _round_up(n, m):
    return ((n + m - 1) // m) * m


def prepare_params(params):
    """One-time cast outside the per-call path: weights -> bf16, biases -> f32."""
    prepared = {}
    for i in range(1, 5):
        prepared[f"w{i}"] = params[f"w{i}"].astype(jnp.bfloat16)
        prepared[f"b{i}"] = params[f"b{i}"].astype(jnp.float32)
    return prepared


def mlp_forward(x, params, tile_b=2048):
    """x: (B, 784) f32; params: prepared dict (bf16 weights (in,out), f32 biases (1,out)).
    Returns f32 (B, 10)."""
    B, F = x.shape
    hidden = params["w1"].shape[1]
    out_features = params["w4"].shape[1]

    # Batch tile: multiple of 8 (sublane), no larger than half the batch (>=2 grid
    # steps so both v7x TensorCores get work), ragged tail handled by a partial
    # last block (no pad copy of x, no output slice).
    tile_b = max(8, min(tile_b, _round_up(pl.cdiv(B, 2), 8)))
    num_tiles = pl.cdiv(B, tile_b)

    w1, b1 = params["w1"], params["b1"]
    w2, b2 = params["w2"], params["b2"]
    w3, b3 = params["w3"], params["b3"]
    w4, b4 = params["w4"], params["b4"]

    # x / out are tiled along the batch; weights & biases are whole-array blocks
    # with a constant index_map so they are DMA'd once and stay resident.
    x_spec = pl.BlockSpec((tile_b, F), lambda i: (i, 0))
    const = lambda a: pl.BlockSpec(a.shape, lambda i: (0, 0))
    out_spec = pl.BlockSpec((tile_b, out_features), lambda i: (i, 0))

    # Advisory cost estimate for XLA's scheduler around the custom call.
    flops = 2 * B * (F * hidden + hidden * hidden + hidden * hidden
                     + hidden * out_features)
    param_bytes = sum(int(params[k].size) * params[k].dtype.itemsize
                      for k in params)
    bytes_accessed = (B * F * x.dtype.itemsize
                      + B * out_features * 4
                      + param_bytes)
    cost = pl.CostEstimate(flops=flops, transcendentals=0,
                           bytes_accessed=bytes_accessed)

    out = pl.pallas_call(
        mlp_kernel,
        out_shape=jax.ShapeDtypeStruct((B, out_features), jnp.float32),
        grid=(num_tiles,),
        in_specs=[x_spec,
                  const(w1), const(b1),
                  const(w2), const(b2),
                  const(w3), const(b3),
                  const(w4), const(b4)],
        out_specs=out_spec,
        compiler_params=pltpu.CompilerParams(
            dimension_semantics=("parallel",),
            vmem_limit_bytes=48 << 20),
        cost_estimate=cost,
    )(x, w1, b1, w2, b2, w3, b3, w4, b4)

    return out


def init_params(key, in_features=784, hidden=20, out_features=10):
    """Deterministic synthetic init (PyTorch-Linear-style uniform bounds)."""
    sizes = [(in_features, hidden), (hidden, hidden), (hidden, hidden),
             (hidden, out_features)]
    params = {}
    keys = jax.random.split(key, 2 * len(sizes))
    for i, (fan_in, fan_out) in enumerate(sizes):
        bound = 1.0 / jnp.sqrt(jnp.float32(fan_in))
        w = jax.random.uniform(keys[2 * i], (fan_in, fan_out),
                               minval=-bound, maxval=bound, dtype=jnp.float32)
        b = jax.random.uniform(keys[2 * i + 1], (1, fan_out),
                               minval=-bound, maxval=bound, dtype=jnp.float32)
        params[f"w{i + 1}"] = w
        params[f"b{i + 1}"] = b
    return params


def _ref_forward_bf16(x, params):
    """Plain-JAX reference mirroring the kernel's mixed precision exactly."""
    h = x.astype(jnp.bfloat16)
    for i in range(1, 5):
        w = params[f"w{i}"].astype(jnp.bfloat16)
        b = params[f"b{i}"].astype(jnp.float32)
        h = jnp.dot(h, w, preferred_element_type=jnp.float32) + b
        if i < 4:
            h = jnp.maximum(h, 0.0).astype(jnp.bfloat16)
    return h


def _ref_forward_f32(x, params):
    """Full-f32 reference of the PyTorch forward (for loose sanity check)."""
    h = x
    for i in range(1, 5):
        h = h @ params[f"w{i}"] + params[f"b{i}"]
        if i < 4:
            h = jnp.maximum(h, 0.0)
    return h


if __name__ == "__main__":
    key = jax.random.PRNGKey(0)
    k_x, k_p = jax.random.split(key)

    # Small demo shapes: 30 flattened 28x28 FashionMNIST-style rows, tile_b=8 so the
    # run exercises a multi-step batch grid plus a ragged (partial) last block (30 % 8 != 0).
    B, IN = 30, 784
    x = jax.random.normal(k_x, (B, IN), dtype=jnp.float32)
    params_f32 = init_params(k_p, in_features=IN, hidden=20, out_features=10)
    params = prepare_params(params_f32)   # one-time dtype prep, outside the hot path

    out = mlp_forward(x, params, tile_b=8)
    out = jax.block_until_ready(out)
    assert out.shape == (B, 10)

    # Tight check against a reference with identical bf16/f32 mixed precision.
    ref_bf16 = _ref_forward_bf16(x, params_f32)
    assert jnp.allclose(out, ref_bf16, atol=5e-3, rtol=5e-3)

    # Loose check against the pure-f32 PyTorch-equivalent forward.
    ref_f32 = _ref_forward_f32(x, params_f32)
    assert jnp.allclose(out, ref_f32, atol=5e-2, rtol=5e-2)

    print("KERNEL_OK")
</pallas_src>

<mosaic_0001>
module attributes {stable_mosaic.version = 11 : i64} {
  func.func @mlp_kernel(%arg0: i32, %arg1: memref<8x784xf32, #tpu.memory_space<vmem>>, %arg2: memref<784x20xbf16, #tpu.memory_space<vmem>>, %arg3: memref<1x20xf32, #tpu.memory_space<vmem>>, %arg4: memref<20x20xbf16, #tpu.memory_space<vmem>>, %arg5: memref<1x20xf32, #tpu.memory_space<vmem>>, %arg6: memref<20x20xbf16, #tpu.memory_space<vmem>>, %arg7: memref<1x20xf32, #tpu.memory_space<vmem>>, %arg8: memref<20x10xbf16, #tpu.memory_space<vmem>>, %arg9: memref<1x10xf32, #tpu.memory_space<vmem>>, %arg10: memref<8x10xf32, #tpu.memory_space<vmem>>) attributes {dimension_semantics = [#tpu.dimension_semantics<parallel>], iteration_bounds = array<i64: 4>, scalar_prefetch = 0 : i64, scratch_operands = 0 : i64, tpu.core_type = #tpu.core_type<tc>, window_params = [{transform_indices = @transform_0, window_bounds = array<i64: 8, 784>}, {pipeline_mode = #tpu.pipeline_mode<synchronous>, transform_indices = @transform_1, window_bounds = array<i64: 784, 20>}, {pipeline_mode = #tpu.pipeline_mode<synchronous>, transform_indices = @transform_2, window_bounds = array<i64: 1, 20>}, {pipeline_mode = #tpu.pipeline_mode<synchronous>, transform_indices = @transform_3, window_bounds = array<i64: 20, 20>}, {pipeline_mode = #tpu.pipeline_mode<synchronous>, transform_indices = @transform_4, window_bounds = array<i64: 1, 20>}, {pipeline_mode = #tpu.pipeline_mode<synchronous>, transform_indices = @transform_5, window_bounds = array<i64: 20, 20>}, {pipeline_mode = #tpu.pipeline_mode<synchronous>, transform_indices = @transform_6, window_bounds = array<i64: 1, 20>}, {pipeline_mode = #tpu.pipeline_mode<synchronous>, transform_indices = @transform_7, window_bounds = array<i64: 20, 10>}, {pipeline_mode = #tpu.pipeline_mode<synchronous>, transform_indices = @transform_8, window_bounds = array<i64: 1, 10>}, {transform_indices = @transform_9, window_bounds = array<i64: 8, 10>}]} {
    %c0 = arith.constant 0 : index
    %c0_0 = arith.constant 0 : index
    %0 = vector.load %arg1[%c0, %c0_0] : memref<8x784xf32, #tpu.memory_space<vmem>>, vector<8x784xf32>
    %1 = arith.truncf %0 : vector<8x784xf32> to vector<8x784xbf16>
    %c0_1 = arith.constant 0 : index
    %c0_2 = arith.constant 0 : index
    %2 = vector.load %arg2[%c0_1, %c0_2] : memref<784x20xbf16, #tpu.memory_space<vmem>>, vector<784x20xbf16>
    %cst = arith.constant dense<0.000000e+00> : vector<8x20xf32>
    %3 = tpu.matmul %1, %2, %cst {dimension_numbers = #tpu.dot_dimension_numbers<[1], [0], [0], [1], [0, 0, 1, 1], [], []>} : vector<8x784xbf16>, vector<784x20xbf16>, vector<8x20xf32> -> vector<8x20xf32>
    %c0_3 = arith.constant 0 : index
    %c0_4 = arith.constant 0 : index
    %4 = vector.load %arg3[%c0_3, %c0_4] : memref<1x20xf32, #tpu.memory_space<vmem>>, vector<1x20xf32>
    %5 = vector.broadcast %4 : vector<1x20xf32> to vector<8x20xf32>
    %6 = arith.addf %3, %5 : vector<8x20xf32>
    %cst_5 = arith.constant 0.000000e+00 : f32
    %7 = vector.broadcast %cst_5 : f32 to vector<8x20xf32>
    %8 = arith.maximumf %6, %7 : vector<8x20xf32>
    %9 = arith.truncf %8 : vector<8x20xf32> to vector<8x20xbf16>
    %c0_6 = arith.constant 0 : index
    %c0_7 = arith.constant 0 : index
    %10 = vector.load %arg4[%c0_6, %c0_7] : memref<20x20xbf16, #tpu.memory_space<vmem>>, vector<20x20xbf16>
    %cst_8 = arith.constant dense<0.000000e+00> : vector<8x20xf32>
    %11 = tpu.matmul %9, %10, %cst_8 {dimension_numbers = #tpu.dot_dimension_numbers<[1], [0], [0], [1], [0, 0, 1, 1], [], []>} : vector<8x20xbf16>, vector<20x20xbf16>, vector<8x20xf32> -> vector<8x20xf32>
    %c0_9 = arith.constant 0 : index
    %c0_10 = arith.constant 0 : index
    %12 = vector.load %arg5[%c0_9, %c0_10] : memref<1x20xf32, #tpu.memory_space<vmem>>, vector<1x20xf32>
    %13 = vector.broadcast %12 : vector<1x20xf32> to vector<8x20xf32>
    %14 = arith.addf %11, %13 : vector<8x20xf32>
    %cst_11 = arith.constant 0.000000e+00 : f32
    %15 = vector.broadcast %cst_11 : f32 to vector<8x20xf32>
    %16 = arith.maximumf %14, %15 : vector<8x20xf32>
    %17 = arith.truncf %16 : vector<8x20xf32> to vector<8x20xbf16>
    %c0_12 = arith.constant 0 : index
    %c0_13 = arith.constant 0 : index
    %18 = vector.load %arg6[%c0_12, %c0_13] : memref<20x20xbf16, #tpu.memory_space<vmem>>, vector<20x20xbf16>
    %cst_14 = arith.constant dense<0.000000e+00> : vector<8x20xf32>
    %19 = tpu.matmul %17, %18, %cst_14 {dimension_numbers = #tpu.dot_dimension_numbers<[1], [0], [0], [1], [0, 0, 1, 1], [], []>} : vector<8x20xbf16>, vector<20x20xbf16>, vector<8x20xf32> -> vector<8x20xf32>
    %c0_15 = arith.constant 0 : index
    %c0_16 = arith.constant 0 : index
    %20 = vector.load %arg7[%c0_15, %c0_16] : memref<1x20xf32, #tpu.memory_space<vmem>>, vector<1x20xf32>
    %21 = vector.broadcast %20 : vector<1x20xf32> to vector<8x20xf32>
    %22 = arith.addf %19, %21 : vector<8x20xf32>
    %cst_17 = arith.constant 0.000000e+00 : f32
    %23 = vector.broadcast %cst_17 : f32 to vector<8x20xf32>
    %24 = arith.maximumf %22, %23 : vector<8x20xf32>
    %25 = arith.truncf %24 : vector<8x20xf32> to vector<8x20xbf16>
    %c0_18 = arith.constant 0 : index
    %c0_19 = arith.constant 0 : index
    %26 = vector.load %arg8[%c0_18, %c0_19] : memref<20x10xbf16, #tpu.memory_space<vmem>>, vector<20x10xbf16>
    %cst_20 = arith.constant dense<0.000000e+00> : vector<8x10xf32>
    %27 = tpu.matmul %25, %26, %cst_20 {dimension_numbers = #tpu.dot_dimension_numbers<[1], [0], [0], [1], [0, 0, 1, 1], [], []>} : vector<8x20xbf16>, vector<20x10xbf16>, vector<8x10xf32> -> vector<8x10xf32>
    %c0_21 = arith.constant 0 : index
    %c0_22 = arith.constant 0 : index
    %28 = vector.load %arg9[%c0_21, %c0_22] : memref<1x10xf32, #tpu.memory_space<vmem>>, vector<1x10xf32>
    %29 = vector.broadcast %28 : vector<1x10xf32> to vector<8x10xf32>
    %30 = arith.addf %27, %29 : vector<8x10xf32>
    %c0_23 = arith.constant 0 : index
    %c0_24 = arith.constant 0 : index
    %31 = vector.load %arg10[%c0_23, %c0_24] : memref<8x10xf32, #tpu.memory_space<vmem>>, vector<8x10xf32>
    tpu.vector_store %arg10[%c0_23, %c0_24], %30 {strides = array<i32>} : memref<8x10xf32, #tpu.memory_space<vmem>>, vector<8x10xf32>,
    return
  }
  func.func @transform_0(%arg0: i32) -> (i32, i32) {
    %c0_i32 = arith.constant 0 : i32
    %c0_i32_0 = arith.constant 0 : i32
    return %arg0, %c0_i32 : i32, i32
  }
  func.func @transform_1(%arg0: i32) -> (i32, i32) {
    %c0_i32 = arith.constant 0 : i32
    %c0_i32_0 = arith.constant 0 : i32
    %c0_i32_1 = arith.constant 0 : i32
    return %c0_i32, %c0_i32_0 : i32, i32
  }
  func.func @transform_2(%arg0: i32) -> (i32, i32) {
    %c0_i32 = arith.constant 0 : i32
    %c0_i32_0 = arith.constant 0 : i32
    %c0_i32_1 = arith.constant 0 : i32
    return %c0_i32, %c0_i32_0 : i32, i32
  }
  func.func @transform_3(%arg0: i32) -> (i32, i32) {
    %c0_i32 = arith.constant 0 : i32
    %c0_i32_0 = arith.constant 0 : i32
    %c0_i32_1 = arith.constant 0 : i32
    return %c0_i32, %c0_i32_0 : i32, i32
  }
  func.func @transform_4(%arg0: i32) -> (i32, i32) {
    %c0_i32 = arith.constant 0 : i32
    %c0_i32_0 = arith.constant 0 : i32
    %c0_i32_1 = arith.constant 0 : i32
    return %c0_i32, %c0_i32_0 : i32, i32
  }
  func.func @transform_5(%arg0: i32) -> (i32, i32) {
    %c0_i32 = arith.constant 0 : i32
    %c0_i32_0 = arith.constant 0 : i32
    %c0_i32_1 = arith.constant 0 : i32
    return %c0_i32, %c0_i32_0 : i32, i32
  }
  func.func @transform_6(%arg0: i32) -> (i32, i32) {
    %c0_i32 = arith.constant 0 : i32
    %c0_i32_0 = arith.constant 0 : i32
    %c0_i32_1 = arith.constant 0 : i32
    return %c0_i32, %c0_i32_0 : i32, i32
  }
  func.func @transform_7(%arg0: i32) -> (i32, i32) {
    %c0_i32 = arith.constant 0 : i32
    %c0_i32_0 = arith.constant 0 : i32
    %c0_i32_1 = arith.constant 0 : i32
    return %c0_i32, %c0_i32_0 : i32, i32
  }
  func.func @transform_8(%arg0: i32) -> (i32, i32) {
    %c0_i32 = arith.constant 0 : i32
    %c0_i32_0 = arith.constant 0 : i32
    %c0_i32_1 = arith.constant 0 : i32
    return %c0_i32, %c0_i32_0 : i32, i32
  }
  func.func @transform_9(%arg0: i32) -> (i32, i32) {
    %c0_i32 = arith.constant 0 : i32
    %c0_i32_0 = arith.constant 0 : i32
    return %arg0, %c0_i32 : i32, i32
  }
}

</mosaic_0001>

<bundles_post_ra>
// kernel: tpu_custom_call.1
= control target key start
LH: loop header
LB: loop body
LE: loop exit
PB: predicated region body
PF: predicated region fallthrough
CT: control target
= control target key end

     0   :  { %s1472_s30 = smov 0   ;;  %s1704_s0 = inlined_call_operand.vmem [shape: f32[30,784], index: 0, kind: input, shape index: {}]   ;;  %s1705_s1 = inlined_call_operand.vmem [shape: bf16[784,20], index: 1, kind: input, shape index: {}]   ;;  %s1706_s2 = inlined_call_operand.vmem [shape: f32[1,20], index: 2, kind: input, shape index: {}]   ;;  %s1707_s3 = inlined_call_operand.vmem [shape: bf16[20,20], index: 3, kind: input, shape index: {}]   ;;  %s1708_s4 = inlined_call_operand.vmem [shape: f32[1,20], index: 4, kind: input, shape index: {}]   ;;  %s1709_s5 = inlined_call_operand.vmem [shape: bf16[20,20], index: 5, kind: input, shape index: {}]   ;;  %s1710_s6 = inlined_call_operand.vmem [shape: f32[1,20], index: 6, kind: input, shape index: {}]   ;;  %s1711_s7 = inlined_call_operand.vmem [shape: bf16[20,10], index: 7, kind: input, shape index: {}]   ;;  %s1712_s8 = inlined_call_operand.vmem [shape: f32[1,10], index: 8, kind: input, shape index: {}]   ;;  %s1713_s9 = inlined_call_operand.vmem [shape: f32[30,10], index: 9, kind: output, shape index: {}]  }
   0x1 LB: > { %s1167_s10 = sadd.s32 4294967295, %s1418_s30   ;;  %p1171_p0 = scmp.ge.s32.totalorder %s1418_s30, 1  ;;  %s1418_s30 = sphi %s1472_s30, %s19_s30  }
   0x2   : > { %p287_p1 = scmp.lt.s32.totalorder %s1418_s30, 5 }
   0x4   : > { %p288_p2 = pnand %p1171_p0, %p287_p1 }
   0x5   : > { %v1357_v0 = vld [vmem:[%s1705_s1 + $0x40] sm:$0xff] (!%p288_p2)   ;;  %v1361_v4 = vld [vmem:[%s1705_s1 + $0x48] sm:$0xff] (!%p288_p2)   ;;  %v1365_v8 = vld [vmem:[%s1705_s1 + $0x50] sm:$0xff] (!%p288_p2)   ;;  %p322_p3 = scmp.lt.s32.totalorder (!%p288_p2), %s1167_s10, 3  ;;  %v1420_v44 = vmov (!%p288_p2), 0.0   ;;  %vm1421_vm0 = vmmov (!%p288_p2), 0  }
   0x6   : > { %291 = sbr.rel (%p288_p2) target bundleno = 944 (0x3b0), region = 56  ;;  %v1358_v1 = vld [vmem:[%s1705_s1] sm:$0xff] (!%p288_p2)   ;;  %1239 = vmatprep.subr.bf16.mxu0 (!%p288_p2), %v1357_v0  ;;  %v1362_v5 = vld [vmem:[%s1705_s1 + $0x8] sm:$0xff] (!%p288_p2)   ;;  %v1366_v9 = vld [vmem:[%s1705_s1 + $0x10] sm:$0xff] (!%p288_p2)   ;;  %vm745_vm1 = vcmask (!%p288_p2), 130048   ;;  %vm934_vm2 = vcmask (!%p288_p2), 1041408  }
   0x7   : > { %v1359_v2 = vld [vmem:[%s1705_s1 + $0xc0] sm:$0xff] (!%p288_p2)   ;;  %1240 = vmatpush3.bf16.msra.mxu0 (!%p288_p2), %v1358_v1  ;;  %v1363_v6 = vld [vmem:[%s1705_s1 + $0xc8] sm:$0xff] (!%p288_p2)   ;;  %v1367_v10 = vld [vmem:[%s1705_s1 + $0xd0] sm:$0xff] (!%p288_p2)   ;;  %vm930_vm3 = vcmask (!%p288_p2), 162816   ;;  %vm1112_vm4 = vcmask (!%p288_p2), 80896  }
   0x8   : > { %v1360_v3 = vld [vmem:[%s1705_s1 + $0x80] sm:$0xff] (!%p288_p2)   ;;  %1261 = vmatprep.subr.bf16.mxu1 (!%p288_p2), %v1359_v2  ;;  %1241 = vmatprep.subr.bf16.mxu0 (!%p288_p2), %v1361_v4  ;;  %v1364_v7 = vld [vmem:[%s1705_s1 + $0x88] sm:$0xff] (!%p288_p2)   ;;  %v1368_v11 = vld [vmem:[%s1705_s1 + $0x90] sm:$0xff] (!%p288_p2)  }
   0x9   : > { %1262 = vmatpush3.bf16.msra.mxu1 (!%p288_p2), %v1360_v3  ;;  %v1369_v12 = vld [vmem:[%s1705_s1 + $0x58] sm:$0xff] (!%p288_p2)   ;;  %v1373_v16 = vld [vmem:[%s1705_s1 + $0x60] sm:$0xff] (!%p288_p2)   ;;  %v1377_v20 = vld [vmem:[%s1705_s1 + $0x68] sm:$0xff] (!%p288_p2)  }
   0xa   : > { %1263 = vmatprep.subr.bf16.mxu1 (!%p288_p2), %v1363_v6  ;;  %v1370_v13 = vld [vmem:[%s1705_s1 + $0x18] sm:$0xff] (!%p288_p2)   ;;  %v1374_v17 = vld [vmem:[%s1705_s1 + $0x20] sm:$0xff] (!%p288_p2)   ;;  %v1378_v21 = vld [vmem:[%s1705_s1 + $0x28] sm:$0xff] (!%p288_p2)  }
   0xb   : > { %1242 = vmatpush3.bf16.msra.mxu0 (!%p288_p2), %v1362_v5  ;;  %v1371_v14 = vld [vmem:[%s1705_s1 + $0xd8] sm:$0xff] (!%p288_p2)   ;;  %v1375_v18 = vld [vmem:[%s1705_s1 + $0xe0] sm:$0xff] (!%p288_p2)   ;;  %v1379_v22 = vld [vmem:[%s1705_s1 + $0xe8] sm:$0xff] (!%p288_p2)  }
   0xc   : > { %1243 = vmatprep.subr.bf16.mxu0 (!%p288_p2), %v1365_v8  ;;  %v1372_v15 = vld [vmem:[%s1705_s1 + $0x98] sm:$0xff] (!%p288_p2)   ;;  %v1376_v19 = vld [vmem:[%s1705_s1 + $0xa0] sm:$0xff] (!%p288_p2)   ;;  %v1380_v23 = vld [vmem:[%s1705_s1 + $0xa8] sm:$0xff] (!%p288_p2)  }
   0xd   : > { %1264 = vmatpush3.bf16.msra.mxu1 %v1364_v7  ;;  %s1715_s10 = smov (!%p322_p3, %s1167_s10), 3  ;;  %v1381_v24 = vld [vmem:[%s1705_s1 + $0x70] sm:$0xff]   ;;  %v1385_v28 = vld [vmem:[%s1705_s1 + $0x78] sm:$0xff]   ;;  %v1389_v36 = vld [vmem:[%s1705_s1 + $0x140] sm:$0xff]  }
   0xe   : > { %1265 = vmatprep.subr.bf16.mxu1 %v1367_v10  ;;  %s1346_s23 = smul.u32 56, %s1715_s10  ;;  %v1382_v25 = vld [vmem:[%s1705_s1 + $0x30] sm:$0xff]   ;;  %v1386_v29 = vld [vmem:[%s1705_s1 + $0x38] sm:$0xff]   ;;  %v1390_v39 = vld [vmem:[%s1705_s1 + $0x100] sm:$0xff]   ;;  %s1173_s19 = sshll.u32 %s1715_s10, 3 }
   0xf   : > { %1244 = vmatpush3.bf16.msra.mxu0 %v1366_v9  ;;  %v1383_v26 = vld [vmem:[%s1705_s1 + $0xf0] sm:$0xff]   ;;  %v1387_v30 = vld [vmem:[%s1705_s1 + $0xf8] sm:$0xff]   ;;  %v1391_v42 = vld [vmem:[%s1705_s1 + $0x148] sm:$0xff]  }
  0x10   : > { %1245 = vmatprep.subr.bf16.mxu0 %v1369_v12  ;;  %v1384_v27 = vld [vmem:[%s1705_s1 + $0xb0] sm:$0xff]   ;;  %s1577_s15 = scalar_lea.vmem %s1704_s0, %s1346_s23  ;;  %v1388_v33 = vld [vmem:[%s1705_s1 + $0xb8] sm:$0xff]   ;;  %v1392_v43 = vld [vmem:[%s1705_s1 + $0x108] sm:$0xff]  }
  0x11   : > { %1266 = vmatpush3.bf16.msra.mxu1 %v1368_v11  ;;  %v333_v31 = vld [vmem:[%s1577_s15 + $0x8] sm:$0xff]  ;;  %v332_v34 = vld [vmem:[%s1577_s15] sm:$0xff]  ;;  %v335_v37 = vld [vmem:[%s1577_s15 + $0x18] sm:$0xff] }
  0x12   : > { %1267 = vmatprep.subr.bf16.mxu1 %v1371_v14  ;;  %v340_v32 = vpack.c.bf16 %v333_v31, %v333_v31  ;;  %v339_v35 = vpack.c.bf16 %v332_v34, %v332_v34  ;;  %v342_v38 = vpack.c.bf16 %v335_v37, %v335_v37  ;;  %v334_v40 = vld [vmem:[%s1577_s15 + $0x10] sm:$0xff]  ;;  %v1395_v47 = vld [vmem:[%s1705_s1 + $0x158] sm:$0xff]   ;;  %v1397_v49 = vld [vmem:[%s1705_s1 + $0x160] sm:$0xff]  }
  0x13   : > { %1246 = vmatpush3.bf16.msra.mxu0 %v1370_v13  ;;  %v341_v41 = vpack.c.bf16 %v334_v40, %v334_v40  ;;  %v1393_v45 = vld [vmem:[%s1705_s1 + $0x150] sm:$0xff]   ;;  %v1396_v48 = vld [vmem:[%s1705_s1 + $0x118] sm:$0xff]   ;;  %v1398_v50 = vld [vmem:[%s1705_s1 + $0x120] sm:$0xff]  }
  0x14   : > { %1247 = vmatprep.subr.bf16.mxu0 %v1373_v16  ;;  %781 = vmatprep.mubr.bf16.mxu0 %v340_v32  ;;  %v1394_v46 = vld [vmem:[%s1705_s1 + $0x110] sm:$0xff]   ;;  %v1399_v51 = vld [vmem:[%s1705_s1 + $0x168] sm:$0xff]   ;;  %v1405_v53 = vld [vmem:[%s1705_s1 + $0x180] sm:$0xff]  }
  0x15   : > { %1268 = vmatpush3.bf16.msra.mxu1 %v1372_v15  ;;  %821 = vmatprep.mubr.bf16.mxu1 %v342_v38  ;;  %v1400_v52 = vld [vmem:[%s1705_s1 + $0x128] sm:$0xff]   ;;  %v1401_v55 = vld [vmem:[%s1705_s1 + $0x170] sm:$0xff]   ;;  %v1403_v60 = vld [vmem:[%s1705_s1 + $0x178] sm:$0xff]  }
  0x16   : > { %1269 = vmatprep.subr.bf16.mxu1 %v1375_v18  ;;  %v337_v54 = vld [vmem:[%s1577_s15 + $0x28] sm:$0xff]  ;;  %v338_v57 = vld [vmem:[%s1577_s15 + $0x30] sm:$0xff]  ;;  %v1404_v61 = vld [vmem:[%s1705_s1 + $0x138] sm:$0xff]  }
  0x17   : > { %1248 = vmatpush3.bf16.msra.mxu0 %v1374_v17  ;;  %v344_v56 = vpack.c.bf16 %v337_v54, %v337_v54  ;;  %v345_v58 = vpack.c.bf16 %v338_v57, %v338_v57  ;;  %v1402_v59 = vld [vmem:[%s1705_s1 + $0x130] sm:$0xff]   ;;  %v336_v62 = vld [vmem:[%s1577_s15 + $0x20] sm:$0xff]  ;;  %v1407_v1 = vld [vmem:[%s1707_s3 + $0x8] ss:$0 sps:$4 sm:$0x33]   ;;  %s330_s15 = scalar_lea.vmem %s1713_s9, %s1173_s19 }
  0x18   : > { %1249 = vmatprep.subr.bf16.mxu0 %v1377_v20  ;;  %v343_v63 = vpack.c.bf16 %v336_v62, %v336_v62  ;;  %v1406_v0 = vld [vmem:[%s1707_s3] sm:$0xff]   ;;  %v936_v2 = vsel %vm934_vm2, %v1407_v1, 0 }
  0x19   : > { %1270 = vmatpush3.bf16.msra.mxu1 %v1376_v19  ;;  %v1174_v4 = vld [vmem:[%s1706_s2] ss:$0 sm:$0xff] }
  0x1a   : > { %1271 = vmatprep.subr.bf16.mxu1 %v1379_v22  ;;  %v1225_v32 = vld [vmem:[%s1708_s4] ss:$0 sm:$0xff] }
  0x1b   : > { %1250 = vmatpush3.bf16.msra.mxu0 %v1378_v21 }
  0x1c   : > { %1251 = vmatprep.subr.bf16.mxu0 %v1381_v24 }
  0x1d   : > { %1272 = vmatpush3.bf16.msra.mxu1 %v1380_v23 }
  0x1e   : > { %1273 = vmatprep.subr.bf16.mxu1 %v1383_v26 }
  0x1f   : > { %1252 = vmatpush3.bf16.msra.mxu0 %v1382_v25 }
  0x20   : > { %1253 = vmatprep.subr.bf16.mxu0 %v1385_v28  ;;  %v1408_v28 = vld [vmem:[%s1709_s5] sm:$0xff]  }
  0x21   : > { %1274 = vmatpush3.bf16.msra.mxu1 %v1384_v27 }
  0x22   : > { %1275 = vmatprep.subr.bf16.mxu1 %v1387_v30  ;;  %v1409_v30 = vld [vmem:[%s1709_s5 + $0x8] ss:$0 sps:$4 sm:$0x33]  }
  0x23   : > { %1254 = vmatpush3.bf16.msra.mxu0 %v1386_v29  ;;  %v1003_v31 = vsel %vm934_vm2, %v1409_v30, 0 }
  0x24   : > { %1283 = vmatprep.subr.bf16.mxu0 %v1389_v36 }
  0x25   : > { %1276 = vmatpush3.bf16.msra.mxu1 %v1388_v33 }
  0x26   : > { %782 = vmatmul.mubr.bf16.vlgmr.msra.gmra.mrb[0].mxu0 %v339_v35  ;;  %1316 = vmatprep.subr.bf16.mxu1 %v1420_v44 }
  0x27   : > { %1284 = vmatpush3.bf16.msra.mxu0 %v1390_v39  ;;  %861 = vmatprep.mubr.bf16.mxu0 %v344_v56  ;;  %v1410_v39 = vld [vmem:[%s1711_s7] sm:$0xff]  }
  0x28   : > { %822 = vmatmul.mubr.bf16.vlgmr.msra.gmra.mrb[0].mxu1 %v341_v41  ;;  %1285 = vmatprep.subr.bf16.mxu0 %v1391_v42  ;;  %v1411_v41 = vld [vmem:[%s1711_s7 + $0x8] ss:$0 sps:$4 sm:$0x33]  }
  0x29   : > { %1318 = vmatprep.mubr.msk.bf16.mxu1 %vm1421_vm0, %v1420_v44  ;;  %1317 = vmatpush3.bf16.msra.mxu1 %v1405_v53  ;;  %v1070_v42 = vsel %vm934_vm2, %v1411_v41, 0 }
  0x2a   : > { %1322 = vmatprep.subr.bf16.mxu1 %v1420_v44 }
  0x2b   : > { %1286 = vmatpush3.bf16.msra.mxu0 %v1392_v43  ;;  %v1229_v43 = vld [vmem:[%s1710_s6] ss:$0 sm:$0xff] }
  0x2c   : > { %1287 = vmatprep.subr.bf16.mxu0 %v1393_v45 }
  0x2f   : > { %1288 = vmatpush3.bf16.msra.mxu0 %v1394_v46 }
  0x30   : > { %1289 = vmatprep.subr.bf16.mxu0 %v1395_v47  ;;  %1319 = vmatmul.mubr.msk.bf16.vlgmr.msra.gmra.mrb[4].mxu1 %vm745_vm1, %v345_v58 }
  0x31   : > { %1326 = vmatprep.mubr.msk.bf16.mxu1 %vm1421_vm0, %v1420_v44  ;;  %1323 = vmatpush3.bf16.msra.mxu1 %v1406_v0 }
  0x32   : > { %1324 = vmatprep.subr.bf16.mxu1 %v1420_v44 }
  0x33   : > { %1290 = vmatpush3.bf16.msra.mxu0 %v1396_v48 }
  0x34   : > { %1291 = vmatprep.subr.bf16.mxu0 %v1397_v49 }
  0x35   : > { %1325 = vmatpush3.bf16.msra.mxu1 %v936_v2 }
  0x36   : > { %1330 = vmatprep.subr.bf16.mxu1 %v1420_v44 }
  0x37   : > { %1292 = vmatpush3.bf16.msra.mxu0 %v1398_v50 }
  0x38   : > { %1293 = vmatprep.subr.bf16.mxu0 %v1399_v51 }
  0x3b   : > { %1294 = vmatpush3.bf16.msra.mxu0 %v1400_v52 }
  0x3c   : > { %1295 = vmatprep.subr.bf16.mxu0 %v1401_v55 }
  0x3f   : > { %1296 = vmatpush3.bf16.msra.mxu0 %v1402_v59 }
  0x40   : > { %1297 = vmatprep.subr.bf16.mxu0 %v1403_v60 }
  0x43   : > { %1298 = vmatpush3.bf16.msra.mxu0 %v1404_v61 }
  0x46   : > { %862 = vmatmul.mubr.bf16.vlgmr.msra.gmra.mrb[4].mxu0 %v343_v63 }
  0xf9   : > { %v1255_v3 = vpop.f32.mrb[0].mxu0 }
  0xfa   : > { %v1256_v5 = vpop.f32.mrb[1].mxu0 }
  0xfb   : > { %v1257_v6 = vadd.f32 %v1256_v5, %v1255_v3  ;;  %v1258_v7 = vpop.f32.mrb[2].mxu0  ;;  %v1277_v8 = vpop.f32.mrb[0].mxu1 }
  0xfc   : > { %v1259_v9 = vpop.f32.mrb[3].mxu0  ;;  %v1278_v11 = vpop.f32.mrb[1].mxu1 }
  0xfd   : > { %v784_v10 = vadd.f32 %v1257_v6, %v1174_v4  ;;  %v1279_v12 = vadd.f32 %v1278_v11, %v1277_v8  ;;  %v1280_v13 = vpop.f32.mrb[2].mxu1 }
  0xfe   : > { %v1281_v14 = vpop.f32.mrb[3].mxu1 }
  0xff   : > { %v824_v15 = vadd.f32 %v1279_v12, %v784_v10 }
 0x103   : > { %v903_v16 = vpop.f32.mrb[4].mxu1 }
 0x104   : > { %v1320_v17 = vpop.f32.mrb[5].mxu1 }
 0x105   : > { %v906_v18 = vpop.f32.mrb[6].mxu1 }
 0x106   : > { %v1321_v19 = vpop.f32.mrb[7].mxu1 }
 0x119   : > { %v1299_v20 = vpop.f32.mrb[4].mxu0 }
 0x11a   : > { %v1300_v21 = vpop.f32.mrb[5].mxu0 }
 0x11b   : > { %v1301_v22 = vadd.f32 %v1300_v21, %v1299_v20  ;;  %v1302_v23 = vpop.f32.mrb[6].mxu0 }
 0x11c   : > { %v1303_v24 = vpop.f32.mrb[7].mxu0 }
 0x11d   : > { %v864_v25 = vadd.f32 %v1301_v22, %v824_v15 }
 0x11f   : > { %v904_v26 = vadd.f32 %v903_v16, %v864_v25 }
 0x121   : > { %v909_v27 = vmax.f32 %v904_v26, 0.0 }
 0x123   : > { %v910_v29 = vpack.c.bf16 %v909_v27, %v909_v27 }
 0x125   : > { %1327 = vmatmul.mubr.msk.bf16.vlgmr.msra.gmra.mrb[8].mxu1 %vm930_vm3, %v910_v29 }
 0x126   : > { %1331 = vmatpush3.bf16.msra.mxu1 %v1408_v28  ;;  %1334 = vmatprep.mubr.msk.bf16.mxu1 %vm1421_vm0, %v1420_v44 }
 0x127   : > { %1332 = vmatprep.subr.bf16.mxu1 %v1420_v44 }
 0x12a   : > { %1333 = vmatpush3.bf16.msra.mxu1 %v1003_v31 }
 0x12b   : > { %1338 = vmatprep.subr.bf16.mxu1 %v1420_v44 }
 0x1f8   : > { %v972_v33 = vpop.f32.mrb[8].mxu1 }
 0x1f9   : > { %v973_v34 = vadd.f32 %v1225_v32, %v972_v33  ;;  %v1328_v35 = vpop.f32.mrb[9].mxu1 }
 0x1fa   : > { %v975_v36 = vpop.f32.mrb[10].mxu1 }
 0x1fb   : > { %v978_v37 = vmax.f32 %v973_v34, 0.0  ;;  %v1329_v38 = vpop.f32.mrb[11].mxu1 }
 0x1fd   : > { %v979_v40 = vpack.c.bf16 %v978_v37, %v978_v37 }
 0x1ff   : > { %1335 = vmatmul.mubr.msk.bf16.vlgmr.msra.gmra.mrb[12].mxu1 %vm930_vm3, %v979_v40 }
 0x200   : > { %1339 = vmatpush3.bf16.msra.mxu1 %v1410_v39  ;;  %1342 = vmatprep.mubr.msk.bf16.mxu1 %vm1421_vm0, %v1420_v44 }
 0x201   : > { %1340 = vmatprep.subr.bf16.mxu1 %v1420_v44  ;;  %v1233_v44 = vld [vmem:[%s1712_s8] ss:$0 sm:$0xff] }
 0x204   : > { %1341 = vmatpush3.bf16.msra.mxu1 %v1070_v42 }
 0x2d2   : > { %v1039_v45 = vpop.f32.mrb[12].mxu1 }
 0x2d3   : > { %v1040_v46 = vadd.f32 %v1229_v43, %v1039_v45  ;;  %v1336_v47 = vpop.f32.mrb[13].mxu1 }
 0x2d4   : > { %v1042_v48 = vpop.f32.mrb[14].mxu1 }
 0x2d5   : > { %v1045_v49 = vmax.f32 %v1040_v46, 0.0  ;;  %v1337_v50 = vpop.f32.mrb[15].mxu1 }
 0x2d7   : > { %v1046_v51 = vpack.c.bf16 %v1045_v49, %v1045_v49 }
 0x2d9   : > { %1343 = vmatmul.mubr.msk.bf16.vlgmr.msra.gmra.mrb[16].mxu1 %vm930_vm3, %v1046_v51 }
 0x3ac   : > { %v1106_v52 = vpop.f32.mrb[16].mxu1 }
 0x3ad   : > { %v1107_v53 = vadd.f32 %v1233_v44, %v1106_v52  ;;  %v1344_v54 = vpop.f32.mrb[17].mxu1 }
 0x3ae   : > { %v1109_v55 = vpop.f32.mrb[18].mxu1 }
 0x3af   : > { %1113 = vst.msk [vmem:[%s330_s15] sm:$0xff] %vm1112_vm4, %v1107_v53  ;;  %v1345_v56 = vpop.f32.mrb[19].mxu1 }
 0x3b0 PF: > { %s19_s30 = sadd.s32 1, %s1418_s30  }
 0x3b1   : > { %p16_p4 = scmp.ge.s32.totalorder %s19_s30, 6  }
 0x3b3   :  { %18 = sbr.rel (!%p16_p4) target bundleno = 1 (0x1), region = 86 }

</bundles_post_ra>
